<compile_context>
chip_gen: v7x
topology: tpu7x:2x2x1
jax: 0.10.0
libtpu: 0.0.40
codegen_flags: <defaults>
</compile_context>

<pallas_src>
import numpy as np
import jax
import jax.numpy as jnp
from jax.experimental import pallas as pl
from jax.experimental.pallas import tpu as pltpu

# ----------------------------- configuration --------------------------------
CONF_THRESHOLD = 0.5
N_IMAGES = 2          # batch of images
C, H, W = 3, 32, 32   # image channels / spatial
K_BOXES = 4           # candidate YOLO boxes per image
RH, RW = 8, 8         # "clip_preprocess" resize target
F = C * RH * RW       # flattened crop feature length = 192 (order: c, r, q)
D = 32                # CLIP embedding dim (synthetic)
E = 64                # synthetic text-embedding input dim


# -------- Pallas kernel: fused crop-resize + CLIP encode + similarity --------
def _yoloclip_kernel(img_ref, wyblk_ref, wx_ref, wcomb_ref, out_ref):
    # img_ref   : (1, C*H, W)        image i, channel folded into the row axis
    # wyblk_ref : (1, K, C*RH, C*H)  per-box block-diagonal row-interp weights
    # wx_ref    : (1, K, W, RW)      per-box column-interp weights
    # wcomb_ref : (1, C*RH, RW)      100 * w_img @ (text_i @ w_txt).T, crop-shaped
    # out_ref   : (1, 1, K)          similarity of each candidate crop vs. image i's text
    img = img_ref[0]                      # (C*H, W)  f32
    wc = wcomb_ref[0]                     # (C*RH, RW) f32
    lane = jax.lax.broadcasted_iota(jnp.int32, (1, K_BOXES), 1)
    sims = jnp.zeros((1, K_BOXES), dtype=jnp.float32)
    for k in range(K_BOXES):              # static unroll (K=4), plain 2-D MXU matmuls
        # bilinear resize of crop k expressed as two interpolation matmuls
        coled = jnp.dot(img, wx_ref[0, k],
                        preferred_element_type=jnp.float32)           # (C*H, RW)
        crop = jnp.dot(wyblk_ref[0, k], coled,
                       preferred_element_type=jnp.float32)            # (C*RH, RW)
        # folded encode_image / encode_text / 100* similarity: one dot with wcomb
        sim_k = jnp.sum(crop * wc)                                    # scalar
        sims = sims + jnp.where(lane == k, sim_k, jnp.float32(0.0))
    out_ref[...] = sims.reshape(1, 1, K_BOXES)


def pallas_yoloclip(img_ch, wyblk, wx, wcomb):
    """
    img_ch : (N, C*H, W)        f32
    wyblk  : (N, K, C*RH, C*H)  f32
    wx     : (N, K, W, RW)      f32
    wcomb  : (N, C*RH, RW)      f32
    returns: (N, 1, K) f32 similarities
    Everything fits trivially in VMEM; one image per grid step, "parallel" so v7x
    spreads the batch over both TensorCores (free on v5e/v6e).
    """
    n = img_ch.shape[0]
    k = wx.shape[1]
    return pl.pallas_call(
        _yoloclip_kernel,
        out_shape=jax.ShapeDtypeStruct((n, 1, k), jnp.float32),
        grid=(n,),
        in_specs=[
            pl.BlockSpec((1, C * H, W), lambda i: (i, 0, 0)),
            pl.BlockSpec((1, k, C * RH, C * H), lambda i: (i, 0, 0, 0)),
            pl.BlockSpec((1, k, W, RW), lambda i: (i, 0, 0, 0)),
            pl.BlockSpec((1, C * RH, RW), lambda i: (i, 0, 0)),
        ],
        out_specs=pl.BlockSpec((1, 1, k), lambda i: (i, 0, 0)),
        compiler_params=pltpu.CompilerParams(dimension_semantics=("parallel",)),
    )(img_ch, wyblk, wx, wcomb)


# ------------- interpolation matrices from box coords (no gathers) -----------
def _bilinear_weights(starts, stops, in_size, out_size):
    """Per-(image, box) bilinear interpolation matrices for one axis.
    starts/stops: (N, K) integer-valued floats (already truncated like torch .int()).
    Returns (N, K, out_size, in_size): out_axis = W @ src_axis, half-pixel centers,
    edge-clamped to the crop window.
    # TODO(synk): real clip_preprocess is bicubic resize + per-channel normalization;
    #             approximated here by bilinear interpolation matrices.
    # TODO(synk): degenerate boxes (width/height 0) are clamped to 1 px; the reference
    #             would error on an empty crop."""
    length = jnp.maximum(stops - starts, 1.0)                          # (N, K)
    r = jnp.arange(out_size, dtype=jnp.float32)
    src = starts[..., None] + (r + 0.5) * (length[..., None] / out_size) - 0.5  # (N,K,out)
    lo = jnp.floor(src)
    frac = src - lo
    low_lim = starts[..., None]
    high_lim = jnp.maximum(stops[..., None] - 1.0, starts[..., None])
    i0 = jnp.clip(lo, low_lim, high_lim)
    i1 = jnp.clip(lo + 1.0, low_lim, high_lim)
    grid_idx = jnp.arange(in_size, dtype=jnp.float32)
    wmat = ((grid_idx[None, None, None, :] == i0[..., None]) * (1.0 - frac[..., None])
            + (grid_idx[None, None, None, :] == i1[..., None]) * frac[..., None])
    return wmat.astype(jnp.float32)                                    # (N,K,out,in)


# ------------------------- fully on-device forward ---------------------------
@jax.jit
def yoloclip_device_forward(images, boxes_xyxy, text_emb, w_img, w_txt):
    """
    images     : (N, C, H, W) f32
    boxes_xyxy : (N, K, 4)    f32 [xmin, ymin, xmax, ymax]
    text_emb   : (N, E)       f32
    w_img      : (F, D)       f32  synthetic CLIP image-encoder projection
    w_txt      : (E, D)       f32  synthetic CLIP text-encoder projection
    returns    : (N, K) f32 similarity of each candidate crop vs. its image's text
    """
    n = images.shape[0]
    k = boxes_xyxy.shape[1]
    boxes_int = jnp.trunc(boxes_xyxy)                   # mirror reference .int()
    xmin, ymin = boxes_int[..., 0], boxes_int[..., 1]
    xmax, ymax = boxes_int[..., 2], boxes_int[..., 3]

    # interpolation matrices (pure broadcast arithmetic; no gathers)
    wy = _bilinear_weights(ymin, ymax, H, RH)                           # (N,K,RH,H)
    wx = jnp.swapaxes(_bilinear_weights(xmin, xmax, W, RW), -1, -2)     # (N,K,W,RW)
    # block-diagonal over channels so row interpolation is one 2-D matmul per box
    wyblk = jnp.einsum('cd,nkrh->nkcrdh', jnp.eye(C, dtype=jnp.float32), wy)
    wyblk = wyblk.reshape(n, k, C * RH, C * H)                          # (N,K,24,96)

    img_ch = images.reshape(n, C * H, W)                                # (N,96,32)

    # fold encode_text + w_img projection + 100* scale into one crop-shaped weight
    text_features = text_emb @ w_txt                                    # (N,D)
    wcomb = (100.0 * (w_img @ text_features.T)).T                       # (N,F)
    wcomb = wcomb.reshape(n, C * RH, RW)                                # (N,24,8)

    sims = pallas_yoloclip(img_ch, wyblk, wx, wcomb)                    # (N,1,K)
    return sims.reshape(n, k)


# --------------------------------- glue --------------------------------------
def yoloclip_forward(images, boxes_per_image, text_emb, w_img, w_txt):
    """
    images          : (N, C, H, W) float32
    boxes_per_image : list of (K, 6) numpy arrays [xmin, ymin, xmax, ymax, conf, cls]
    text_emb        : (N, E) synthetic tokenized-text embedding (one text per image)
    Returns bbox_results: per image either None or a list of K boxes with the
    CLIP-best box first (reproducing the reference semantics, including its
    filtered-index quirk).
    """
    n = images.shape[0]
    boxes_arr = jnp.asarray(
        np.stack([b[:, :4] for b in boxes_per_image]).astype(np.float32))     # (N, K, 4)

    sims = yoloclip_device_forward(images, boxes_arr, text_emb, w_img, w_txt)  # (N, K)
    sims_np = np.asarray(jax.block_until_ready(sims))   # single host sync for the batch

    # --- confidence filter, argmax, and box reordering (reference semantics) -
    # TODO(synk): YOLO backbone is an external pretrained model; detections are synthesized.
    bbox_results = []
    for i in range(n):
        boxes = boxes_per_image[i]
        conf = boxes[:, 4].astype(np.float64)
        mask = conf > CONF_THRESHOLD
        if mask.any():
            masked = np.where(mask, sims_np[i], -np.inf)
            idx_full = int(np.argmax(masked))          # best confident box (full index)
            # the reference indexes the FULL box list with the position inside the
            # filtered `objects` list -- reproduce that quirk exactly:
            idx = int(np.sum(mask[:idx_full]))
            final_boxes = [boxes[idx]] + [b for j, b in enumerate(boxes) if j != idx]
            bbox_results.append(final_boxes)
        else:
            bbox_results.append(None)
    return bbox_results, sims


# --------------------------------- main ---------------------------------------
if __name__ == "__main__":
    key = jax.random.PRNGKey(0)
    k_img, k_wimg, k_wtxt, k_txt = jax.random.split(key, 4)

    # deterministic synthetic inputs / parameters
    images = jax.random.normal(k_img, (N_IMAGES, C, H, W), dtype=jnp.float32)
    w_img = jax.random.normal(k_wimg, (F, D), dtype=jnp.float32) * 0.05
    w_txt = jax.random.normal(k_wtxt, (E, D), dtype=jnp.float32) * 0.05
    text_emb = jax.random.normal(k_txt, (N_IMAGES, E), dtype=jnp.float32)

    # synthetic deterministic "YOLO" detections: [xmin, ymin, xmax, ymax, conf, cls]
    boxes_per_image = [
        np.array([[ 2,  2, 18, 20, 0.90, 0],
                  [ 5,  6, 30, 30, 0.30, 1],
                  [ 0,  0, 16, 16, 0.75, 2],
                  [10,  4, 28, 26, 0.60, 3]], dtype=np.float32),
        np.array([[ 1,  1, 15, 15, 0.20, 0],
                  [ 4,  8, 24, 28, 0.45, 1],
                  [ 3,  3, 20, 22, 0.10, 2],
                  [ 8,  2, 30, 18, 0.40, 3]], dtype=np.float32),  # all below threshold -> None
    ]

    results, sims = yoloclip_forward(images, boxes_per_image, text_emb, w_img, w_txt)
    jax.block_until_ready(sims)

    assert sims.shape == (N_IMAGES, K_BOXES)
    assert np.all(np.isfinite(np.asarray(sims)))
    assert len(results) == N_IMAGES
    assert results[0] is not None and len(results[0]) == K_BOXES
    assert results[1] is None
    print("KERNEL_OK")
</pallas_src>

<mosaic_0001>
module attributes {stable_mosaic.version = 11 : i64} {
  func.func @_yoloclip_kernel(%arg0: i32, %arg1: memref<1x96x32xf32, #tpu.memory_space<vmem>>, %arg2: memref<1x4x24x96xf32, #tpu.memory_space<vmem>>, %arg3: memref<1x4x32x8xf32, #tpu.memory_space<vmem>>, %arg4: memref<1x24x8xf32, #tpu.memory_space<vmem>>, %arg5: memref<1x1x4xf32, #tpu.memory_space<vmem>>) attributes {dimension_semantics = [#tpu.dimension_semantics<parallel>], iteration_bounds = array<i64: 2>, scalar_prefetch = 0 : i64, scratch_operands = 0 : i64, tpu.core_type = #tpu.core_type<tc>, window_params = [{transform_indices = @transform_0, window_bounds = array<i64: 1, 96, 32>}, {transform_indices = @transform_1, window_bounds = array<i64: 1, 4, 24, 96>}, {transform_indices = @transform_2, window_bounds = array<i64: 1, 4, 32, 8>}, {transform_indices = @transform_3, window_bounds = array<i64: 1, 24, 8>}, {transform_indices = @transform_4, window_bounds = array<i64: 1, 1, 4>}]} {
    %c0 = arith.constant 0 : index
    %c0_0 = arith.constant 0 : index
    %c0_1 = arith.constant 0 : index
    %0 = vector.load %arg1[%c0, %c0_0, %c0_1] : memref<1x96x32xf32, #tpu.memory_space<vmem>>, vector<1x96x32xf32>
    %1 = vector.shape_cast %0 : vector<1x96x32xf32> to vector<96x32xf32>
    %c0_2 = arith.constant 0 : index
    %c0_3 = arith.constant 0 : index
    %c0_4 = arith.constant 0 : index
    %2 = vector.load %arg4[%c0_2, %c0_3, %c0_4] : memref<1x24x8xf32, #tpu.memory_space<vmem>>, vector<1x24x8xf32>
    %3 = vector.shape_cast %2 : vector<1x24x8xf32> to vector<24x8xf32>
    %4 = tpu.iota {dimensions = array<i32: 1>} : vector<1x4xi32>
    %cst = arith.constant 0.000000e+00 : f32
    %5 = vector.broadcast %cst : f32 to vector<1x4xf32>
    %c0_5 = arith.constant 0 : index
    %c0_6 = arith.constant 0 : index
    %c0_7 = arith.constant 0 : index
    %c0_8 = arith.constant 0 : index
    %6 = vector.load %arg3[%c0_5, %c0_6, %c0_7, %c0_8] : memref<1x4x32x8xf32, #tpu.memory_space<vmem>>, vector<1x1x32x8xf32>
    %7 = vector.shape_cast %6 : vector<1x1x32x8xf32> to vector<32x8xf32>
    %cst_9 = arith.constant dense<0.000000e+00> : vector<96x8xf32>
    %8 = tpu.matmul %1, %7, %cst_9 {dimension_numbers = #tpu.dot_dimension_numbers<[1], [0], [0], [1], [0, 0, 1, 1], [], []>} : vector<96x32xf32>, vector<32x8xf32>, vector<96x8xf32> -> vector<96x8xf32>
    %c0_10 = arith.constant 0 : index
    %c0_11 = arith.constant 0 : index
    %c0_12 = arith.constant 0 : index
    %c0_13 = arith.constant 0 : index
    %9 = vector.load %arg2[%c0_10, %c0_11, %c0_12, %c0_13] : memref<1x4x24x96xf32, #tpu.memory_space<vmem>>, vector<1x1x24x96xf32>
    %10 = vector.shape_cast %9 : vector<1x1x24x96xf32> to vector<24x96xf32>
    %cst_14 = arith.constant dense<0.000000e+00> : vector<24x8xf32>
    %11 = tpu.matmul %10, %8, %cst_14 {dimension_numbers = #tpu.dot_dimension_numbers<[1], [0], [0], [1], [0, 0, 1, 1], [], []>} : vector<24x96xf32>, vector<96x8xf32>, vector<24x8xf32> -> vector<24x8xf32>
    %12 = arith.mulf %11, %3 : vector<24x8xf32>
    %13 = vector.shape_cast %12 : vector<24x8xf32> to vector<1x24x8xf32>
    %cst_15 = arith.constant dense<0.000000e+00> : vector<1xf32>
    %14 = vector.multi_reduction <add>, %13, %cst_15 [1, 2] : vector<1x24x8xf32> to vector<1xf32>
    %15 = vector.shape_cast %14 : vector<1xf32> to vector<1x1x1xf32>
    %16 = vector.extract %15[0, 0, 0] : f32 from vector<1x1x1xf32>
    %c0_i32 = arith.constant 0 : i32
    %17 = vector.broadcast %c0_i32 : i32 to vector<1x4xi32>
    %18 = arith.cmpi eq, %4, %17 : vector<1x4xi32>
    %cst_16 = arith.constant 0.000000e+00 : f32
    %19 = vector.broadcast %16 : f32 to vector<1x4xf32>
    %20 = vector.broadcast %cst_16 : f32 to vector<1x4xf32>
    %21 = arith.select %18, %19, %20 : vector<1x4xi1>, vector<1x4xf32>
    %22 = arith.addf %5, %21 : vector<1x4xf32>
    %c0_17 = arith.constant 0 : index
    %c1 = arith.constant 1 : index
    %c0_18 = arith.constant 0 : index
    %c0_19 = arith.constant 0 : index
    %23 = vector.load %arg3[%c0_17, %c1, %c0_18, %c0_19] : memref<1x4x32x8xf32, #tpu.memory_space<vmem>>, vector<1x1x32x8xf32>
    %24 = vector.shape_cast %23 : vector<1x1x32x8xf32> to vector<32x8xf32>
    %cst_20 = arith.constant dense<0.000000e+00> : vector<96x8xf32>
    %25 = tpu.matmul %1, %24, %cst_20 {dimension_numbers = #tpu.dot_dimension_numbers<[1], [0], [0], [1], [0, 0, 1, 1], [], []>} : vector<96x32xf32>, vector<32x8xf32>, vector<96x8xf32> -> vector<96x8xf32>
    %c0_21 = arith.constant 0 : index
    %c1_22 = arith.constant 1 : index
    %c0_23 = arith.constant 0 : index
    %c0_24 = arith.constant 0 : index
    %26 = vector.load %arg2[%c0_21, %c1_22, %c0_23, %c0_24] : memref<1x4x24x96xf32, #tpu.memory_space<vmem>>, vector<1x1x24x96xf32>
    %27 = vector.shape_cast %26 : vector<1x1x24x96xf32> to vector<24x96xf32>
    %cst_25 = arith.constant dense<0.000000e+00> : vector<24x8xf32>
    %28 = tpu.matmul %27, %25, %cst_25 {dimension_numbers = #tpu.dot_dimension_numbers<[1], [0], [0], [1], [0, 0, 1, 1], [], []>} : vector<24x96xf32>, vector<96x8xf32>, vector<24x8xf32> -> vector<24x8xf32>
    %29 = arith.mulf %28, %3 : vector<24x8xf32>
    %30 = vector.shape_cast %29 : vector<24x8xf32> to vector<1x24x8xf32>
    %cst_26 = arith.constant dense<0.000000e+00> : vector<1xf32>
    %31 = vector.multi_reduction <add>, %30, %cst_26 [1, 2] : vector<1x24x8xf32> to vector<1xf32>
    %32 = vector.shape_cast %31 : vector<1xf32> to vector<1x1x1xf32>
    %33 = vector.extract %32[0, 0, 0] : f32 from vector<1x1x1xf32>
    %c1_i32 = arith.constant 1 : i32
    %34 = vector.broadcast %c1_i32 : i32 to vector<1x4xi32>
    %35 = arith.cmpi eq, %4, %34 : vector<1x4xi32>
    %cst_27 = arith.constant 0.000000e+00 : f32
    %36 = vector.broadcast %33 : f32 to vector<1x4xf32>
    %37 = vector.broadcast %cst_27 : f32 to vector<1x4xf32>
    %38 = arith.select %35, %36, %37 : vector<1x4xi1>, vector<1x4xf32>
    %39 = arith.addf %22, %38 : vector<1x4xf32>
    %c0_28 = arith.constant 0 : index
    %c2 = arith.constant 2 : index
    %c0_29 = arith.constant 0 : index
    %c0_30 = arith.constant 0 : index
    %40 = vector.load %arg3[%c0_28, %c2, %c0_29, %c0_30] : memref<1x4x32x8xf32, #tpu.memory_space<vmem>>, vector<1x1x32x8xf32>
    %41 = vector.shape_cast %40 : vector<1x1x32x8xf32> to vector<32x8xf32>
    %cst_31 = arith.constant dense<0.000000e+00> : vector<96x8xf32>
    %42 = tpu.matmul %1, %41, %cst_31 {dimension_numbers = #tpu.dot_dimension_numbers<[1], [0], [0], [1], [0, 0, 1, 1], [], []>} : vector<96x32xf32>, vector<32x8xf32>, vector<96x8xf32> -> vector<96x8xf32>
    %c0_32 = arith.constant 0 : index
    %c2_33 = arith.constant 2 : index
    %c0_34 = arith.constant 0 : index
    %c0_35 = arith.constant 0 : index
    %43 = vector.load %arg2[%c0_32, %c2_33, %c0_34, %c0_35] : memref<1x4x24x96xf32, #tpu.memory_space<vmem>>, vector<1x1x24x96xf32>
    %44 = vector.shape_cast %43 : vector<1x1x24x96xf32> to vector<24x96xf32>
    %cst_36 = arith.constant dense<0.000000e+00> : vector<24x8xf32>
    %45 = tpu.matmul %44, %42, %cst_36 {dimension_numbers = #tpu.dot_dimension_numbers<[1], [0], [0], [1], [0, 0, 1, 1], [], []>} : vector<24x96xf32>, vector<96x8xf32>, vector<24x8xf32> -> vector<24x8xf32>
    %46 = arith.mulf %45, %3 : vector<24x8xf32>
    %47 = vector.shape_cast %46 : vector<24x8xf32> to vector<1x24x8xf32>
    %cst_37 = arith.constant dense<0.000000e+00> : vector<1xf32>
    %48 = vector.multi_reduction <add>, %47, %cst_37 [1, 2] : vector<1x24x8xf32> to vector<1xf32>
    %49 = vector.shape_cast %48 : vector<1xf32> to vector<1x1x1xf32>
    %50 = vector.extract %49[0, 0, 0] : f32 from vector<1x1x1xf32>
    %c2_i32 = arith.constant 2 : i32
    %51 = vector.broadcast %c2_i32 : i32 to vector<1x4xi32>
    %52 = arith.cmpi eq, %4, %51 : vector<1x4xi32>
    %cst_38 = arith.constant 0.000000e+00 : f32
    %53 = vector.broadcast %50 : f32 to vector<1x4xf32>
    %54 = vector.broadcast %cst_38 : f32 to vector<1x4xf32>
    %55 = arith.select %52, %53, %54 : vector<1x4xi1>, vector<1x4xf32>
    %56 = arith.addf %39, %55 : vector<1x4xf32>
    %c0_39 = arith.constant 0 : index
    %c3 = arith.constant 3 : index
    %c0_40 = arith.constant 0 : index
    %c0_41 = arith.constant 0 : index
    %57 = vector.load %arg3[%c0_39, %c3, %c0_40, %c0_41] : memref<1x4x32x8xf32, #tpu.memory_space<vmem>>, vector<1x1x32x8xf32>
    %58 = vector.shape_cast %57 : vector<1x1x32x8xf32> to vector<32x8xf32>
    %cst_42 = arith.constant dense<0.000000e+00> : vector<96x8xf32>
    %59 = tpu.matmul %1, %58, %cst_42 {dimension_numbers = #tpu.dot_dimension_numbers<[1], [0], [0], [1], [0, 0, 1, 1], [], []>} : vector<96x32xf32>, vector<32x8xf32>, vector<96x8xf32> -> vector<96x8xf32>
    %c0_43 = arith.constant 0 : index
    %c3_44 = arith.constant 3 : index
    %c0_45 = arith.constant 0 : index
    %c0_46 = arith.constant 0 : index
    %60 = vector.load %arg2[%c0_43, %c3_44, %c0_45, %c0_46] : memref<1x4x24x96xf32, #tpu.memory_space<vmem>>, vector<1x1x24x96xf32>
    %61 = vector.shape_cast %60 : vector<1x1x24x96xf32> to vector<24x96xf32>
    %cst_47 = arith.constant dense<0.000000e+00> : vector<24x8xf32>
    %62 = tpu.matmul %61, %59, %cst_47 {dimension_numbers = #tpu.dot_dimension_numbers<[1], [0], [0], [1], [0, 0, 1, 1], [], []>} : vector<24x96xf32>, vector<96x8xf32>, vector<24x8xf32> -> vector<24x8xf32>
    %63 = arith.mulf %62, %3 : vector<24x8xf32>
    %64 = vector.shape_cast %63 : vector<24x8xf32> to vector<1x24x8xf32>
    %cst_48 = arith.constant dense<0.000000e+00> : vector<1xf32>
    %65 = vector.multi_reduction <add>, %64, %cst_48 [1, 2] : vector<1x24x8xf32> to vector<1xf32>
    %66 = vector.shape_cast %65 : vector<1xf32> to vector<1x1x1xf32>
    %67 = vector.extract %66[0, 0, 0] : f32 from vector<1x1x1xf32>
    %c3_i32 = arith.constant 3 : i32
    %68 = vector.broadcast %c3_i32 : i32 to vector<1x4xi32>
    %69 = arith.cmpi eq, %4, %68 : vector<1x4xi32>
    %cst_49 = arith.constant 0.000000e+00 : f32
    %70 = vector.broadcast %67 : f32 to vector<1x4xf32>
    %71 = vector.broadcast %cst_49 : f32 to vector<1x4xf32>
    %72 = arith.select %69, %70, %71 : vector<1x4xi1>, vector<1x4xf32>
    %73 = arith.addf %56, %72 : vector<1x4xf32>
    %74 = vector.shape_cast %73 : vector<1x4xf32> to vector<1x1x4xf32>
    %c0_50 = arith.constant 0 : index
    %c0_51 = arith.constant 0 : index
    %c0_52 = arith.constant 0 : index
    %75 = vector.load %arg5[%c0_50, %c0_51, %c0_52] : memref<1x1x4xf32, #tpu.memory_space<vmem>>, vector<1x1x4xf32>
    tpu.vector_store %arg5[%c0_50, %c0_51, %c0_52], %74 {strides = array<i32>} : memref<1x1x4xf32, #tpu.memory_space<vmem>>, vector<1x1x4xf32>,
    return
  }
  func.func @transform_0(%arg0: i32) -> (i32, i32, i32) {
    %c0_i32 = arith.constant 0 : i32
    %c0_i32_0 = arith.constant 0 : i32
    %c0_i32_1 = arith.constant 0 : i32
    return %arg0, %c0_i32, %c0_i32_0 : i32, i32, i32
  }
  func.func @transform_1(%arg0: i32) -> (i32, i32, i32, i32) {
    %c0_i32 = arith.constant 0 : i32
    %c0_i32_0 = arith.constant 0 : i32
    %c0_i32_1 = arith.constant 0 : i32
    %c0_i32_2 = arith.constant 0 : i32
    return %arg0, %c0_i32, %c0_i32_0, %c0_i32_1 : i32, i32, i32, i32
  }
  func.func @transform_2(%arg0: i32) -> (i32, i32, i32, i32) {
    %c0_i32 = arith.constant 0 : i32
    %c0_i32_0 = arith.constant 0 : i32
    %c0_i32_1 = arith.constant 0 : i32
    %c0_i32_2 = arith.constant 0 : i32
    return %arg0, %c0_i32, %c0_i32_0, %c0_i32_1 : i32, i32, i32, i32
  }
  func.func @transform_3(%arg0: i32) -> (i32, i32, i32) {
    %c0_i32 = arith.constant 0 : i32
    %c0_i32_0 = arith.constant 0 : i32
    %c0_i32_1 = arith.constant 0 : i32
    return %arg0, %c0_i32, %c0_i32_0 : i32, i32, i32
  }
  func.func @transform_4(%arg0: i32) -> (i32, i32, i32) {
    %c0_i32 = arith.constant 0 : i32
    %c0_i32_0 = arith.constant 0 : i32
    %c0_i32_1 = arith.constant 0 : i32
    return %arg0, %c0_i32, %c0_i32_0 : i32, i32, i32
  }
}

</mosaic_0001>

<bundles_post_ra>
// kernel: yoloclip_device_forward.1
= control target key start
LH: loop header
LB: loop body
LE: loop exit
PB: predicated region body
PF: predicated region fallthrough
CT: control target
= control target key end

     0   :  { %9 = vsyncpa [#allocation3], 0  ;;  %s2408_s0 = inlined_call_operand.vmem [shape: f32[2,96,32], index: 0, kind: input, shape index: {}]   ;;  %s2409_s1 = inlined_call_operand.vmem [shape: f32[2,4,24,96], index: 1, kind: input, shape index: {}]   ;;  %s2410_s2 = inlined_call_operand.vmem [shape: f32[2,4,32,8], index: 2, kind: input, shape index: {}]   ;;  %s2411_s3 = inlined_call_operand.vmem [shape: f32[2,24,8], index: 3, kind: input, shape index: {}]   ;;  %s2412_s4 = inlined_call_operand.hbm [shape: f32[2,1,4], index: 4, kind: output, shape index: {}]  }
   0x1   :  { %11 = vsyncpa [#allocation3 + $0x1], 0  ;;  %s2094_s15 = smov 0   ;;  %s2096_s16 = smov 0  }
   0x2   :  { %s2098_s17 = smov 0   ;;  %s2100_s18 = smov 0  }
   0x3 LB: > { %s2115_s19 = sadd.s32 4294967295, %s2063_s18   ;;  %s1391_s20 = sadd.s32 4294967294, %s2063_s18   ;;  %s2063_s18 = sphi %s2100_s18, %s2418_s18   ;;  %s2059_s17 = sphi %s2098_s17, %s2417_s17   ;;  %s2055_s16 = sphi %s2096_s16, %s2416_s16   ;;  %s2051_s15 = sphi %s2094_s15, %s2415_s15  }
   0x4   : > { %s2119_s21 = sadd.s32 1, %s2063_s18   ;;  %s128_s22 = sadd.s32 1, %s2059_s17 }
   0x5   : > { %s125_s23 = ssub.s32 %s2063_s18, %s2119_s21  ;;  %p138_p0 = scmp.ne.s32.totalorder %s2059_s17, %s2055_s16 }
   0x6   : > { %p126_p1 = scmp.eq.s32.totalorder %s125_s23, 0  ;;  %p139_p2 = scmp.eq.s32.totalorder %s2115_s19, 1 }
   0x7   : > { %p144_p3 = scmp.ne.s32.totalorder %s2055_s16, %s2051_s15  ;;  %p145_p4 = scmp.eq.s32.totalorder %s1391_s20, 1 }
   0x8   : > { %s2130_s24 = scalar_select %p126_p1, %s2059_s17, %s128_s22  }
   0x9   : > { %p2132_p5 = por %p139_p2, %p138_p0  ;;  %p2136_p6 = por %p145_p4, %p144_p3 }
   0xa   : > { %p1394_p7 = scmp.ge.s32.totalorder %s2063_s18, 1  ;;  %p195_p8 = scmp.lt.s32.totalorder %s2063_s18, 3 }
   0xc   : > { %p196_p9 = pnand %p1394_p7, %p195_p8 }
   0xd   : > { %p235_p10 = scmp.lt.s32.totalorder (!%p196_p9), %s2115_s19, 1  ;;  %vm276_vm0 = vcmask (!%p196_p9), 261120   ;;  %v2065_v36 = vmov (!%p196_p9), 0.0|0.0   ;;  %vm2066_vm1 = vmmov (!%p196_p9), 0   ;;  %v2067_v37 = vmov (!%p196_p9), 0.0   ;;  %s1481_s30 = sshll.u32 (!%p196_p9), %s2115_s19, 4 }
   0xe   : > { %199 = sbr.rel (%p196_p9) target bundleno = 793 (0x319), region = 36  ;;  %1853 = vmatprep.subr.bf16.mxu1 (!%p196_p9), %v2065_v36  ;;  %1659 = vmatprep.mubr.msk.f32.mxu1 (!%p196_p9), %vm2066_vm1, %v2067_v37  ;;  %vm441_vm2 = vcmask (!%p196_p9), 785408   ;;  %vm534_vm3 = vcmask (!%p196_p9), 64512   ;;  %vm1285_vm8 = vcmask (!%p196_p9), 24576   ;;  %s2366_s10 = scalar_lea.hbm (!%p196_p9), %s2412_s4, %s1481_s30 }
  0x15   : > { %s2144_s27 = scalar_select %p235_p10, %s2115_s19, 1 }
  0x17   : > { %s1484_s28 = sshll.u32 %s2144_s27, 7  ;;  %s1949_s29 = smul.u32 96, %s2144_s27 }
  0x18   : > { %s2151_s6 = scalar_lea.vmem %s2410_s2, %s1484_s28  ;;  %s1950_s13 = smul.u32 24, %s2144_s27 }
  0x19   : > { %v272_v0 = vld [vmem:[%s2151_s6] sm:$0xff]  ;;  %v273_v1 = vld [vmem:[%s2151_s6 + $0x8] sm:$0xff]  ;;  %v274_v2 = vld [vmem:[%s2151_s6 + $0x10] sm:$0xff]  ;;  %s2161_s9 = scalar_lea.vmem %s2408_s0, %s1949_s29  ;;  %s2279_s12 = scalar_lea.vmem %s2409_s1, %s1949_s29 }
  0x1a   : > { %v1845_v3 = vpack.c.bf16 %v273_v1, %v272_v0  ;;  %v275_v4 = vld [vmem:[%s2151_s6 + $0x18] sm:$0xff]  ;;  %v2165_v5 = vld [vmem:[%s2161_s9] sm:$0xff]  ;;  %v1416_v8 = vld [vmem:[%s2151_s6 + $0x28] sm:$0xff]  ;;  %s254_s22 = scalar_lea.vmem %s2411_s3, %s1950_s13  ;;  %s233_s29 = sand.u32 1, %s2055_s16  }
  0x1b   : > { %v1849_v6 = vpack.c.bf16 %v275_v4, %v274_v2  ;;  %1617 = vmatprep.mubr.msk.f32.mxu0 %vm276_vm0, %v2165_v5  ;;  %v1415_v7 = vld [vmem:[%s2151_s6 + $0x20] sm:$0xff]  ;;  %v1417_v10 = vld [vmem:[%s2151_s6 + $0x30] sm:$0xff]  ;;  %v1418_v11 = vld [vmem:[%s2151_s6 + $0x38] sm:$0xff]  ;;  %s1288_s19 = scalar_lea.sflag [#allocation3], %s233_s29 }
  0x1c   : > { %1846 = vmatprep.subr.bf16.mxu0 %v1845_v3  ;;  %v1871_v9 = vpack.c.bf16 %v1416_v8, %v1415_v7  ;;  %v2174_v12 = vld [vmem:[%s2161_s9 + $0x8] sm:$0xff]  ;;  %v2177_v13 = vld [vmem:[%s2161_s9 + $0x10] sm:$0xff]  ;;  %v1875_v14 = vpack.c.bf16 %v1418_v11, %v1417_v10  ;;  %v1437_v15 = vld [vmem:[%s2151_s6 + $0x40] sm:$0xff] }
  0x1d   : > { %1848 = vmatpush3.bf16.msra.mxu0 %v1845_v3  ;;  %v1438_v16 = vld [vmem:[%s2151_s6 + $0x48] sm:$0xff]  ;;  %v2186_v17 = vld [vmem:[%s2161_s9 + $0x18] sm:$0xff]  ;;  %v2189_v18 = vld [vmem:[%s2161_s9 + $0x20] sm:$0xff] }
  0x1e   : > { %1850 = vmatprep.subr.bf16.mxu0 %v1849_v6  ;;  %v1897_v19 = vpack.c.bf16 %v1438_v16, %v1437_v15  ;;  %v260_v20 = vld [vmem:[%s2161_s9 + $0x28] sm:$0xff]  ;;  %v261_v21 = vld [vmem:[%s2161_s9 + $0x30] sm:$0xff]  ;;  %v262_v22 = vld [vmem:[%s2161_s9 + $0x38] sm:$0xff] }
  0x1f   : > { %v263_v23 = vld [vmem:[%s2161_s9 + $0x40] sm:$0xff]  ;;  %v264_v24 = vld [vmem:[%s2161_s9 + $0x48] sm:$0xff]  ;;  %v265_v25 = vld [vmem:[%s2161_s9 + $0x50] sm:$0xff] }
  0x20   : > { %v266_v26 = vld [vmem:[%s2161_s9 + $0x58] sm:$0xff]  ;;  %v1439_v27 = vld [vmem:[%s2151_s6 + $0x50] sm:$0xff]  ;;  %v1459_v30 = vld [vmem:[%s2151_s6 + $0x60] sm:$0xff] }
  0x21   : > { %1852 = vmatpush3.bf16.msra.mxu0 %v1849_v6  ;;  %v1440_v28 = vld [vmem:[%s2151_s6 + $0x58] sm:$0xff]  ;;  %v1460_v31 = vld [vmem:[%s2151_s6 + $0x68] sm:$0xff]  ;;  %v1461_v33 = vld [vmem:[%s2151_s6 + $0x70] sm:$0xff] }
  0x22   : > { %1872 = vmatprep.subr.bf16.mxu0 %v1871_v9  ;;  %v1901_v29 = vpack.c.bf16 %v1440_v28, %v1439_v27  ;;  %v1923_v32 = vpack.c.bf16 %v1460_v31, %v1459_v30  ;;  %v1462_v34 = vld [vmem:[%s2151_s6 + $0x78] sm:$0xff]  ;;  %v438_v57 = vld [vmem:[%s2279_s12] sm:$0xff]  ;;  %v439_v61 = vld [vmem:[%s2279_s12 + $0x8] sm:$0xff]  ;;  %s234_s6 = scalar_lea.vmem [#allocation2], %s233_s29 }
  0x23   : > { %v1927_v35 = vpack.c.bf16 %v1462_v34, %v1461_v33  ;;  %v440_v1 = vld [vmem:[%s2279_s12 + $0x10] sm:$0xff]  ;;  %s1300_s7 = sshll.u32 %s234_s6, 4  ;;  %s2368_s7 = int_to_ptr.vmem [resolvable:$true] %s1300_s7 }
  0x24   : > { %1618 = vmatmul.mubr.msk.f32.vlgmr.msra.gmra.mrb[0].mxu0 %vm276_vm0, %v2174_v12  ;;  %s2001_s11 = scalar_lea.vmem %s2368_s7, 16 }
  0x25   : > { %1874 = vmatpush3.bf16.msra.mxu0 %v1871_v9  ;;  %1620 = vmatprep.mubr.msk.f32.mxu0 %vm276_vm0, %v2177_v13  ;;  %p2002_p11 = scmp.ne.s32.totalorder %s2368_s7, %s2001_s11 }
  0x26   : > { %1876 = vmatprep.subr.bf16.mxu0 %v1875_v14 }
  0x27   : > { %p2003_p12 = pnand %p2002_p11, %p2132_p5 }
  0x28   : > { %1621 = vmatmul.mubr.msk.f32.gmra.mrb[2].mxu0 %vm276_vm0, %v2186_v17 }
  0x29   : > { %1623 = vmatprep.mubr.msk.f32.mxu0 %vm276_vm0, %v2189_v18  ;;  %1878 = vmatpush3.bf16.msra.mxu0 %v1875_v14  ;;  %v1431_v14 = vld [vmem:[%s2279_s12 + $0x18] sm:$0xff]  ;;  %p2004_p13 = pneg %p2003_p12 }
  0x2a   : > { %1898 = vmatprep.subr.bf16.mxu0 %v1897_v19 }
  0x2c   : > { %1624 = vmatmul.mubr.msk.f32.gmra.mrb[4].mxu0 %vm276_vm0, %v260_v20 }
  0x2d   : > { %1626 = vmatprep.mubr.msk.f32.mxu0 %vm276_vm0, %v261_v21 }
  0x30   : > { %1627 = vmatmul.mubr.msk.f32.gmra.mrb[6].mxu0 %vm276_vm0, %v262_v22 }
  0x31   : > { %1629 = vmatprep.mubr.msk.f32.mxu0 %vm276_vm0, %v263_v23 }
  0x34   : > { %1630 = vmatmul.mubr.msk.f32.gmra.mrb[8].mxu0 %vm276_vm0, %v264_v24 }
  0x35   : > { %1632 = vmatprep.mubr.msk.f32.mxu0 %vm276_vm0, %v265_v25 }
  0x38   : > { %1633 = vmatmul.mubr.msk.f32.gmra.mrb[10].mxu0 %vm276_vm0, %v266_v26 }
  0x39   : > { %1676 = vmatprep.mubr.msk.f32.mxu0 %vm276_vm0, %v2165_v5 }
  0x3c   : > { %1677 = vmatmul.mubr.msk.f32.vlgmr.msra.gmra.mrb[12].mxu0 %vm276_vm0, %v2174_v12 }
  0x3d   : > { %1900 = vmatpush3.bf16.msra.mxu0 %v1897_v19  ;;  %1679 = vmatprep.mubr.msk.f32.mxu0 %vm276_vm0, %v2177_v13 }
  0x3e   : > { %1902 = vmatprep.subr.bf16.mxu0 %v1901_v29 }
  0x40   : > { %1680 = vmatmul.mubr.msk.f32.gmra.mrb[14].mxu0 %vm276_vm0, %v2186_v17 }
  0x41   : > { %1682 = vmatprep.mubr.msk.f32.mxu0 %vm276_vm0, %v2189_v18  ;;  %1904 = vmatpush3.bf16.msra.mxu0 %v1901_v29 }
  0x42   : > { %1924 = vmatprep.subr.bf16.mxu0 %v1923_v32 }
  0x44   : > { %1683 = vmatmul.mubr.msk.f32.gmra.mrb[16].mxu0 %vm276_vm0, %v260_v20 }
  0x45   : > { %1685 = vmatprep.mubr.msk.f32.mxu0 %vm276_vm0, %v261_v21 }
  0x48   : > { %1686 = vmatmul.mubr.msk.f32.gmra.mrb[18].mxu0 %vm276_vm0, %v262_v22 }
  0x49   : > { %1688 = vmatprep.mubr.msk.f32.mxu0 %vm276_vm0, %v263_v23 }
  0x4c   : > { %1689 = vmatmul.mubr.msk.f32.gmra.mrb[20].mxu0 %vm276_vm0, %v264_v24 }
  0x4d   : > { %1691 = vmatprep.mubr.msk.f32.mxu0 %vm276_vm0, %v265_v25 }
  0x50   : > { %1692 = vmatmul.mubr.msk.f32.gmra.mrb[22].mxu0 %vm276_vm0, %v266_v26 }
  0x51   : > { %1735 = vmatprep.mubr.msk.f32.mxu0 %vm276_vm0, %v2165_v5 }
  0x54   : > { %1736 = vmatmul.mubr.msk.f32.vlgmr.msra.gmra.mrb[24].mxu0 %vm276_vm0, %v2174_v12 }
  0x55   : > { %1926 = vmatpush3.bf16.msra.mxu0 %v1923_v32  ;;  %1738 = vmatprep.mubr.msk.f32.mxu0 %vm276_vm0, %v2177_v13 }
  0x56   : > { %1928 = vmatprep.subr.bf16.mxu0 %v1927_v35 }
  0x58   : > { %1739 = vmatmul.mubr.msk.f32.gmra.mrb[26].mxu0 %vm276_vm0, %v2186_v17 }
  0x59   : > { %1741 = vmatprep.mubr.msk.f32.mxu0 %vm276_vm0, %v2189_v18  ;;  %1930 = vmatpush3.bf16.msra.mxu0 %v1927_v35  ;;  %v1453_v35 = vld [vmem:[%s2279_s12 + $0x30] sm:$0xff] }
  0x5c   : > { %1742 = vmatmul.mubr.msk.f32.gmra.mrb[28].mxu0 %vm276_vm0, %v260_v20 }
  0x5d   : > { %1744 = vmatprep.mubr.msk.f32.mxu0 %vm276_vm0, %v261_v21 }
  0x60   : > { %1745 = vmatmul.mubr.msk.f32.gmra.mrb[30].mxu0 %vm276_vm0, %v262_v22 }
  0x61   : > { %1747 = vmatprep.mubr.msk.f32.mxu0 %vm276_vm0, %v263_v23 }
  0x64   : > { %1748 = vmatmul.mubr.msk.f32.gmra.mrb[32].mxu0 %vm276_vm0, %v264_v24 }
  0x65   : > { %1750 = vmatprep.mubr.msk.f32.mxu0 %vm276_vm0, %v265_v25 }
  0x68   : > { %1751 = vmatmul.mubr.msk.f32.gmra.mrb[34].mxu0 %vm276_vm0, %v266_v26 }
  0x69   : > { %1794 = vmatprep.mubr.msk.f32.mxu0 %vm276_vm0, %v2165_v5 }
  0x6c   : > { %1795 = vmatmul.mubr.msk.f32.vlgmr.msra.gmra.mrb[36].mxu0 %vm276_vm0, %v2174_v12 }
  0x6d   : > { %1797 = vmatprep.mubr.msk.f32.mxu0 %vm276_vm0, %v2177_v13 }
  0x70   : > { %1798 = vmatmul.mubr.msk.f32.gmra.mrb[38].mxu0 %vm276_vm0, %v2186_v17 }
  0x71   : > { %1800 = vmatprep.mubr.msk.f32.mxu0 %vm276_vm0, %v2189_v18  ;;  %v1432_v18 = vld [vmem:[%s2279_s12 + $0x20] sm:$0xff] }
  0x74   : > { %1801 = vmatmul.mubr.msk.f32.gmra.mrb[40].mxu0 %vm276_vm0, %v260_v20 }
  0x75   : > { %1803 = vmatprep.mubr.msk.f32.mxu0 %vm276_vm0, %v261_v21 }
  0x78   : > { %1804 = vmatmul.mubr.msk.f32.gmra.mrb[42].mxu0 %vm276_vm0, %v262_v22  ;;  %v1433_v22 = vld [vmem:[%s2279_s12 + $0x28] sm:$0xff] }
  0x79   : > { %1806 = vmatprep.mubr.msk.f32.mxu0 %vm276_vm0, %v263_v23 }
  0x7c   : > { %1807 = vmatmul.mubr.msk.f32.gmra.mrb[44].mxu0 %vm276_vm0, %v264_v24 }
  0x7d   : > { %1809 = vmatprep.mubr.msk.f32.mxu0 %vm276_vm0, %v265_v25 }
  0x80   : > { %1810 = vmatmul.mubr.msk.f32.gmra.mrb[46].mxu0 %vm276_vm0, %v266_v26 }
  0xf7   : > { %v1619_v38 = vpop.f32.mrb[0].mxu0 }
  0xf8   : > { %v379_v39 = vpop.f32.mrb[1].mxu0 }
  0xf9   : > { %v1854_v40 = vpack.c.bf16 %v1619_v38, %v379_v39 }
  0xfb   : > { %v1622_v41 = vpop.f32.mrb[2].mxu0  ;;  %1855 = vmatpush3.bf16.msra.mxu1 %v1854_v40 }
  0xfc   : > { %v389_v42 = vpop.f32.mrb[3].mxu0  ;;  %1856 = vmatprep.subr.bf16.mxu1 %v2065_v36 }
  0xfd   : > { %v1857_v43 = vpack.c.bf16 %v1622_v41, %v389_v42  ;;  %v1454_v41 = vld [vmem:[%s2279_s12 + $0x38] sm:$0xff] }
  0xff   : > { %v1625_v44 = vpop.f32.mrb[4].mxu0  ;;  %1858 = vmatpush3.bf16.msra.mxu1 %v1857_v43 }
 0x100   : > { %v399_v45 = vpop.f32.mrb[5].mxu0  ;;  %1859 = vmatprep.subr.bf16.mxu1 %v2065_v36 }
 0x101   : > { %v1860_v46 = vpack.c.bf16 %v1625_v44, %v399_v45  ;;  %v1455_v45 = vld [vmem:[%s2279_s12 + $0x40] sm:$0xff] }
 0x103   : > { %v1628_v47 = vpop.f32.mrb[6].mxu0  ;;  %1861 = vmatpush3.bf16.msra.mxu1 %v1860_v46 }
 0x104   : > { %v409_v48 = vpop.f32.mrb[7].mxu0  ;;  %1862 = vmatprep.subr.bf16.mxu1 %v2065_v36 }
 0x105   : > { %v1863_v49 = vpack.c.bf16 %v1628_v47, %v409_v48 }
 0x107   : > { %v1631_v50 = vpop.f32.mrb[8].mxu0  ;;  %1864 = vmatpush3.bf16.msra.mxu1 %v1863_v49 }
 0x108   : > { %v419_v51 = vpop.f32.mrb[9].mxu0  ;;  %1865 = vmatprep.subr.bf16.mxu1 %v2065_v36 }
 0x109   : > { %v1866_v52 = vpack.c.bf16 %v1631_v50, %v419_v51 }
 0x10b   : > { %v1634_v53 = vpop.f32.mrb[10].mxu0  ;;  %1867 = vmatpush3.bf16.msra.mxu1 %v1866_v52 }
 0x10c   : > { %v429_v54 = vpop.f32.mrb[11].mxu0  ;;  %1868 = vmatprep.subr.bf16.mxu1 %v2065_v36 }
 0x10d   : > { %v1869_v55 = vpack.c.bf16 %v1634_v53, %v429_v54 }
 0x10f   : > { %1870 = vmatpush3.bf16.msra.mxu1 %v1869_v55  ;;  %v1678_v56 = vpop.f32.mrb[12].mxu0 }
 0x110   : > { %v624_v58 = vpop.f32.mrb[13].mxu0  ;;  %1879 = vmatprep.subr.bf16.mxu1 %v2065_v36 }
 0x111   : > { %v1880_v59 = vpack.c.bf16 %v1678_v56, %v624_v58  ;;  %v1476_v58 = vld [vmem:[%s2279_s12 + $0x50] sm:$0xff] }
 0x112   : > { %1660 = vmatmul.mubr.msk.f32.vlgmr.msra.gmra.mrb[0].mxu1 %vm441_vm2, %v438_v57  ;;  %v1475_v57 = vld [vmem:[%s2279_s12 + $0x48] sm:$0xff] }
 0x113   : > { %v1681_v60 = vpop.f32.mrb[14].mxu0  ;;  %1881 = vmatpush3.bf16.msra.mxu1 %v1880_v59  ;;  %1662 = vmatprep.mubr.msk.f32.mxu1 %vm2066_vm1, %v2067_v37  ;;  %v1477_v59 = vld [vmem:[%s2279_s12 + $0x58] sm:$0xff]  ;;  %s2068_s12 = smov [#allocation2]  }
 0x114   : > { %v634_v62 = vpop.f32.mrb[15].mxu0  ;;  %1882 = vmatprep.subr.bf16.mxu1 %v2065_v36  ;;  %s2005_s13 = sshll.u32 %s2068_s12, 4  ;;  %s2006_s13 = int_to_ptr.vmem [resolvable:$false] %s2005_s13 }
 0x115   : > { %v1883_v63 = vpack.c.bf16 %v1681_v60, %v634_v62  ;;  %v268_v62 = vld [vmem:[%s254_s22 + $0x8] sm:$0xff]  ;;  %s2007_s14 = scalar_lea.vmem %s2006_s13, 32  ;;  %p2008_p0 = scmp.lt.s32.totalorder %s2368_s7, %s2006_s13 }
 0x116   : > { %1663 = vmatmul.mubr.msk.f32.gmra.mrb[2].mxu1 %vm441_vm2, %v439_v61  ;;  %p2009_p1 = scmp.lt.s32.totalorder %s2007_s14, %s2001_s11 }
 0x117   : > { %v1684_v0 = vpop.f32.mrb[16].mxu0  ;;  %1884 = vmatpush3.bf16.msra.mxu1 %v1883_v63  ;;  %1665 = vmatprep.mubr.msk.f32.mxu1 %vm2066_vm1, %v2067_v37 }
 0x118   : > { %v644_v2 = vpop.f32.mrb[17].mxu0  ;;  %1885 = vmatprep.subr.bf16.mxu1 %v2065_v36  ;;  %p2010_p2 = por %p2009_p1, %p2008_p0 }
 0x119   : > { %v1886_v3 = vpack.c.bf16 %v1684_v0, %v644_v2 }
 0x11a   : > { %1666 = vmatmul.mubr.msk.f32.gmra.mrb[4].mxu1 %vm441_vm2, %v440_v1  ;;  %p2011_p3 = pnand %p2010_p2, %p2004_p13 }
 0x11b   : > { %v1687_v4 = vpop.f32.mrb[18].mxu0  ;;  %1887 = vmatpush3.bf16.msra.mxu1 %v1886_v3  ;;  %1718 = vmatprep.mubr.msk.f32.mxu1 %vm2066_vm1, %v2067_v37  ;;  %v269_v3 = vld [vmem:[%s254_s22 + $0x10] sm:$0xff] }
 0x11c   : > { %v654_v5 = vpop.f32.mrb[19].mxu0  ;;  %1888 = vmatprep.subr.bf16.mxu1 %v2065_v36 }
 0x11d   : > { %v1889_v6 = vpack.c.bf16 %v1687_v4, %v654_v5 }
 0x11f   : > { %v1690_v7 = vpop.f32.mrb[20].mxu0  ;;  %1890 = vmatpush3.bf16.msra.mxu1 %v1889_v6 }
 0x120   : > { %v664_v8 = vpop.f32.mrb[21].mxu0  ;;  %1891 = vmatprep.subr.bf16.mxu1 %v2065_v36 }
 0x121   : > { %v1892_v9 = vpack.c.bf16 %v1690_v7, %v664_v8 }
 0x123   : > { %v1693_v10 = vpop.f32.mrb[22].mxu0  ;;  %1893 = vmatpush3.bf16.msra.mxu1 %v1892_v9 }
 0x124   : > { %v674_v11 = vpop.f32.mrb[23].mxu0  ;;  %1894 = vmatprep.subr.bf16.mxu1 %v2065_v36 }
 0x125   : > { %v1895_v12 = vpack.c.bf16 %v1693_v10, %v674_v11 }
 0x127   : > { %1896 = vmatpush3.bf16.msra.mxu1 %v1895_v12  ;;  %v1737_v13 = vpop.f32.mrb[24].mxu0 }
 0x128   : > { %v868_v15 = vpop.f32.mrb[25].mxu0  ;;  %1905 = vmatprep.subr.bf16.mxu1 %v2065_v36 }
 0x129   : > { %v1906_v16 = vpack.c.bf16 %v1737_v13, %v868_v15 }
 0x12a   : > { %1719 = vmatmul.mubr.msk.f32.vlgmr.msra.gmra.mrb[6].mxu1 %vm441_vm2, %v1431_v14 }
 0x12b   : > { %v1740_v17 = vpop.f32.mrb[26].mxu0  ;;  %1907 = vmatpush3.bf16.msra.mxu1 %v1906_v16  ;;  %1721 = vmatprep.mubr.msk.f32.mxu1 %vm2066_vm1, %v2067_v37 }
 0x12c   : > { %v878_v19 = vpop.f32.mrb[27].mxu0  ;;  %1908 = vmatprep.subr.bf16.mxu1 %v2065_v36 }
 0x12d   : > { %v1909_v20 = vpack.c.bf16 %v1740_v17, %v878_v19 }
 0x12e   : > { %1722 = vmatmul.mubr.msk.f32.gmra.mrb[8].mxu1 %vm441_vm2, %v1432_v18 }
 0x12f   : > { %v1743_v21 = vpop.f32.mrb[28].mxu0  ;;  %1910 = vmatpush3.bf16.msra.mxu1 %v1909_v20  ;;  %1724 = vmatprep.mubr.msk.f32.mxu1 %vm2066_vm1, %v2067_v37 }
 0x130   : > { %v888_v23 = vpop.f32.mrb[29].mxu0  ;;  %1911 = vmatprep.subr.bf16.mxu1 %v2065_v36 }
 0x131   : > { %v1912_v24 = vpack.c.bf16 %v1743_v21, %v888_v23 }
 0x132   : > { %1725 = vmatmul.mubr.msk.f32.gmra.mrb[10].mxu1 %vm441_vm2, %v1433_v22 }
 0x133   : > { %v1746_v25 = vpop.f32.mrb[30].mxu0  ;;  %1913 = vmatpush3.bf16.msra.mxu1 %v1912_v24  ;;  %1777 = vmatprep.mubr.msk.f32.mxu1 %vm2066_vm1, %v2067_v37 }
 0x134   : > { %v898_v26 = vpop.f32.mrb[31].mxu0  ;;  %1914 = vmatprep.subr.bf16.mxu1 %v2065_v36 }
 0x135   : > { %v1915_v27 = vpack.c.bf16 %v1746_v25, %v898_v26 }
 0x137   : > { %v1749_v28 = vpop.f32.mrb[32].mxu0  ;;  %1916 = vmatpush3.bf16.msra.mxu1 %v1915_v27 }
 0x138   : > { %v908_v29 = vpop.f32.mrb[33].mxu0  ;;  %1917 = vmatprep.subr.bf16.mxu1 %v2065_v36 }
 0x139   : > { %v1918_v30 = vpack.c.bf16 %v1749_v28, %v908_v29 }
 0x13b   : > { %v1752_v31 = vpop.f32.mrb[34].mxu0  ;;  %1919 = vmatpush3.bf16.msra.mxu1 %v1918_v30 }
 0x13c   : > { %v918_v32 = vpop.f32.mrb[35].mxu0  ;;  %1920 = vmatprep.subr.bf16.mxu1 %v2065_v36 }
 0x13d   : > { %v1921_v33 = vpack.c.bf16 %v1752_v31, %v918_v32 }
 0x13f   : > { %1922 = vmatpush3.bf16.msra.mxu1 %v1921_v33  ;;  %v1796_v34 = vpop.f32.mrb[36].mxu0 }
 0x140   : > { %v1112_v38 = vpop.f32.mrb[37].mxu0  ;;  %1931 = vmatprep.subr.bf16.mxu1 %v2065_v36 }
 0x141   : > { %v1932_v39 = vpack.c.bf16 %v1796_v34, %v1112_v38 }
 0x142   : > { %1778 = vmatmul.mubr.msk.f32.vlgmr.msra.gmra.mrb[12].mxu1 %vm441_vm2, %v1453_v35 }
 0x143   : > { %v1799_v40 = vpop.f32.mrb[38].mxu0  ;;  %1933 = vmatpush3.bf16.msra.mxu1 %v1932_v39  ;;  %1780 = vmatprep.mubr.msk.f32.mxu1 %vm2066_vm1, %v2067_v37 }
 0x144   : > { %v1122_v42 = vpop.f32.mrb[39].mxu0  ;;  %1934 = vmatprep.subr.bf16.mxu1 %v2065_v36 }
 0x145   : > { %v1935_v43 = vpack.c.bf16 %v1799_v40, %v1122_v42 }
 0x146   : > { %1781 = vmatmul.mubr.msk.f32.gmra.mrb[14].mxu1 %vm441_vm2, %v1454_v41 }
 0x147   : > { %v1802_v44 = vpop.f32.mrb[40].mxu0  ;;  %1936 = vmatpush3.bf16.msra.mxu1 %v1935_v43  ;;  %1783 = vmatprep.mubr.msk.f32.mxu1 %vm2066_vm1, %v2067_v37 }
 0x148   : > { %v1132_v46 = vpop.f32.mrb[41].mxu0  ;;  %1937 = vmatprep.subr.bf16.mxu1 %v2065_v36 }
 0x149   : > { %v1938_v47 = vpack.c.bf16 %v1802_v44, %v1132_v46 }
 0x14a   : > { %1784 = vmatmul.mubr.msk.f32.gmra.mrb[16].mxu1 %vm441_vm2, %v1455_v45 }
 0x14b   : > { %v1805_v48 = vpop.f32.mrb[42].mxu0  ;;  %1939 = vmatpush3.bf16.msra.mxu1 %v1938_v47  ;;  %1836 = vmatprep.mubr.msk.f32.mxu1 %vm2066_vm1, %v2067_v37 }
 0x14c   : > { %v1142_v49 = vpop.f32.mrb[43].mxu0  ;;  %1940 = vmatprep.subr.bf16.mxu1 %v2065_v36 }
 0x14d   : > { %v1941_v50 = vpack.c.bf16 %v1805_v48, %v1142_v49 }
 0x14f   : > { %v1808_v51 = vpop.f32.mrb[44].mxu0  ;;  %1942 = vmatpush3.bf16.msra.mxu1 %v1941_v50 }
 0x150   : > { %v1152_v52 = vpop.f32.mrb[45].mxu0  ;;  %1943 = vmatprep.subr.bf16.mxu1 %v2065_v36 }
 0x151   : > { %v1944_v53 = vpack.c.bf16 %v1808_v51, %v1152_v52 }
 0x153   : > { %v1811_v54 = vpop.f32.mrb[46].mxu0  ;;  %1945 = vmatpush3.bf16.msra.mxu1 %v1944_v53 }
 0x154   : > { %v1162_v55 = vpop.f32.mrb[47].mxu0  ;;  %1946 = vmatprep.subr.bf16.mxu1 %v2065_v36  ;;  %v267_v36 = vld [vmem:[%s254_s22] sm:$0xff] }
 0x155   : > { %v1947_v56 = vpack.c.bf16 %v1811_v54, %v1162_v55 }
 0x157   : > { %1948 = vmatpush3.bf16.msra.mxu1 %v1947_v56 }
 0x15a   : > { %1837 = vmatmul.mubr.msk.f32.vlgmr.msra.gmra.mrb[18].mxu1 %vm441_vm2, %v1475_v57 }
 0x15b   : > { %1839 = vmatprep.mubr.msk.f32.mxu1 %vm2066_vm1, %v2067_v37 }
 0x15e   : > { %1840 = vmatmul.mubr.msk.f32.gmra.mrb[20].mxu1 %vm441_vm2, %v1476_v58 }
 0x15f   : > { %1842 = vmatprep.mubr.msk.f32.mxu1 %vm2066_vm1, %v2067_v37 }
 0x162   : > { %1843 = vmatmul.mubr.msk.f32.gmra.mrb[22].mxu1 %vm441_vm2, %v1477_v59 }
 0x1e5   : > { %v517_v60 = vpop.f32.mrb[0].mxu1 }
 0x1e6   : > { %v1661_v61 = vpop.f32.mrb[1].mxu1  ;;  %v531_v63 = vmul.f32 %v517_v60, %v267_v36 }
 0x1e8   : > { %v535_v37 = vsel %vm534_vm3, %v531_v63, 0.0 }
 0x1e9   : > { %v522_v0 = vpop.f32.mrb[2].mxu1 }
 0x1ea   : > { %v532_v1 = vmul.f32 %v522_v0, %v268_v62  ;;  %v1664_v2 = vpop.f32.mrb[3].mxu1 }
 0x1ec   : > { %v536_v4 = vsel %vm534_vm3, %v532_v1, 0.0 }
 0x1ed   : > { %v527_v5 = vpop.f32.mrb[4].mxu1  ;;  %v537_v6 = vadd.f32 %v536_v4, %v535_v37 }
 0x1ee   : > { %v533_v7 = vmul.f32 %v527_v5, %v269_v3  ;;  %v1667_v8 = vpop.f32.mrb[5].mxu1 }
 0x1f0   : > { %v538_v9 = vsel %vm534_vm3, %v533_v7, 0.0 }
 0x1f1   : > { %v539_v10 = vadd.f32 %v538_v9, %v537_v6 }
 0x1f3   : > { %540 = vadd.xlane.f32.xlu0 %v539_v10 }
 0x1fd   : > { %v762_v11 = vpop.f32.mrb[6].mxu1 }
 0x1fe   : > { %v1720_v12 = vpop.f32.mrb[7].mxu1  ;;  %v776_v13 = vmul.f32 %v762_v11, %v267_v36 }
 0x200   : > { %v779_v17 = vsel %vm534_vm3, %v776_v13, 0.0 }
 0x201   : > { %v767_v14 = vpop.f32.mrb[8].mxu1 }
 0x202   : > { %v777_v15 = vmul.f32 %v767_v14, %v268_v62  ;;  %v1723_v16 = vpop.f32.mrb[9].mxu1 }
 0x204   : > { %v780_v18 = vsel %vm534_vm3, %v777_v15, 0.0 }
 0x205   : > { %v772_v19 = vpop.f32.mrb[10].mxu1  ;;  %v781_v20 = vadd.f32 %v780_v18, %v779_v17  ;;  %v270_v17 = vlaneseq }
 0x206   : > { %v778_v21 = vmul.f32 %v772_v19, %v269_v3  ;;  %v1726_v22 = vpop.f32.mrb[11].mxu1 }
 0x207   : > { %v271_v18 = vand.u32 127, %v270_v17 }
 0x208   : > { %v782_v23 = vsel %vm534_vm3, %v778_v21, 0.0 }
 0x209   : > { %v783_v24 = vadd.f32 %v782_v23, %v781_v20  ;;  %vm793_vm4 = vcmp.eq.s32.totalorder %v271_v18, 1  ;;  %vm549_vm5 = vcmp.eq.s32.totalorder %v271_v18, 0  ;;  %vm1037_vm6 = vcmp.eq.s32.totalorder %v271_v18, 2 }
 0x20a   : > { %vm1281_vm7 = vcmp.eq.s32.totalorder %v271_v18, 3 }
 0x20b   : > { %784 = vadd.xlane.f32.xlu0 %v783_v24 }
 0x215   : > { %v1006_v25 = vpop.f32.mrb[12].mxu1 }
 0x216   : > { %v1779_v26 = vpop.f32.mrb[13].mxu1  ;;  %v1020_v27 = vmul.f32 %v1006_v25, %v267_v36 }
 0x218   : > { %v1023_v31 = vsel %vm534_vm3, %v1020_v27, 0.0 }
 0x219   : > { %v1011_v28 = vpop.f32.mrb[14].mxu1 }
 0x21a   : > { %v1021_v29 = vmul.f32 %v1011_v28, %v268_v62  ;;  %v1782_v30 = vpop.f32.mrb[15].mxu1 }
 0x21c   : > { %v1024_v32 = vsel %vm534_vm3, %v1021_v29, 0.0 }
 0x21d   : > { %v1016_v33 = vpop.f32.mrb[16].mxu1  ;;  %v1025_v34 = vadd.f32 %v1024_v32, %v1023_v31 }
 0x21e   : > { %v1022_v35 = vmul.f32 %v1016_v33, %v269_v3  ;;  %v1785_v38 = vpop.f32.mrb[17].mxu1 }
 0x220   : > { %v1026_v39 = vsel %vm534_vm3, %v1022_v35, 0.0 }
 0x221   : > { %v1027_v40 = vadd.f32 %v1026_v39, %v1025_v34 }
 0x223   : > { %1028 = vadd.xlane.f32.xlu1 %v1027_v40 }
 0x22d   : > { %v1250_v41 = vpop.f32.mrb[18].mxu1 }
 0x22e   : > { %v1838_v42 = vpop.f32.mrb[19].mxu1  ;;  %v1264_v43 = vmul.f32 %v1250_v41, %v267_v36 }
 0x230   : > { %v1267_v47 = vsel %vm534_vm3, %v1264_v43, 0.0 }
 0x231   : > { %v1255_v44 = vpop.f32.mrb[20].mxu1 }
 0x232   : > { %v1265_v45 = vmul.f32 %v1255_v44, %v268_v62  ;;  %v1841_v46 = vpop.f32.mrb[21].mxu1 }
 0x234   : > { %v1268_v48 = vsel %vm534_vm3, %v1265_v45, 0.0 }
 0x235   : > { %v1260_v49 = vpop.f32.mrb[22].mxu1  ;;  %v1269_v50 = vadd.f32 %v1268_v48, %v1267_v47 }
 0x236   : > { %v1266_v51 = vmul.f32 %v1260_v49, %v269_v3  ;;  %v1844_v52 = vpop.f32.mrb[23].mxu1 }
 0x238   : > { %v1270_v53 = vsel %vm534_vm3, %v1266_v51, 0.0 }
 0x239   : > { %v1271_v54 = vadd.f32 %v1270_v53, %v1269_v50 }
 0x23b   : > { %1272 = vadd.xlane.f32.xlu1 %v1271_v54 }
 0x280   : > { %v541_v55 = vpop.xlane.xlu0 %540 }
 0x281   : > { %v542_v56 = vrot.slane %v541_v55, 4 }
 0x283   : > { %v543_v57 = vadd.f32 %v542_v56, %v541_v55 }
 0x285   : > { %v544_v58 = vrot.slane %v543_v57, 2 }
 0x287   : > { %v545_v59 = vadd.f32 %v544_v58, %v543_v57 }
 0x289   : > { %v546_v36 = vrot.slane %v545_v59, 1 }
 0x28b   : > { %v547_v60 = vadd.f32 %v546_v36, %v545_v59 }
 0x28d   : > { %1951 = vpush %v547_v60 }
 0x298   : > { %v785_v61 = vpop.xlane.xlu0 %784 }
 0x299   : > { %v786_v62 = vrot.slane %v785_v61, 4 }
 0x29b   : > { %v787_v63 = vadd.f32 %v786_v62, %v785_v61 }
 0x29d   : > { %v788_v0 = vrot.slane %v787_v63, 2 }
 0x29f   : > { %v789_v1 = vadd.f32 %v788_v0, %v787_v63 }
 0x2a1   : > { %v790_v2 = vrot.slane %v789_v1, 1 }
 0x2a3   : > { %v791_v3 = vadd.f32 %v790_v2, %v789_v1 }
 0x2a5   : > { %1953 = vpush %v791_v3 }
 0x2b0   : > { %v1029_v37 = vpop.xlane.xlu1 %1028 }
 0x2b1   : > { %v1030_v4 = vrot.slane %v1029_v37, 4 }
 0x2b3   : > { %v1031_v5 = vadd.f32 %v1030_v4, %v1029_v37 }
 0x2b5   : > { %v1032_v6 = vrot.slane %v1031_v5, 2 }
 0x2b7   : > { %v1033_v7 = vadd.f32 %v1032_v6, %v1031_v5 }
 0x2b9   : > { %v1034_v8 = vrot.slane %v1033_v7, 1 }
 0x2bb   : > { %v1035_v9 = vadd.f32 %v1034_v8, %v1033_v7 }
 0x2bd   : > { %1955 = vpush %v1035_v9 }
 0x2be   : > { %s1952_s23 = spop %1951 }
 0x2bf   : > { %v550_v20 = vstv %s1952_s23 }
 0x2c0   : > { %v551_v23 = vsel %vm549_vm5, %v550_v20, 0.0 }
 0x2c8   : > { %v1273_v10 = vpop.xlane.xlu1 %1272 }
 0x2c9   : > { %v1274_v11 = vrot.slane %v1273_v10, 4 }
 0x2cb   : > { %v1275_v12 = vadd.f32 %v1274_v11, %v1273_v10 }
 0x2cd   : > { %v1276_v13 = vrot.slane %v1275_v12, 2 }
 0x2cf   : > { %v1277_v14 = vadd.f32 %v1276_v13, %v1275_v12 }
 0x2d1   : > { %v1278_v15 = vrot.slane %v1277_v14, 1 }
 0x2d3   : > { %v1279_v16 = vadd.f32 %v1278_v15, %v1277_v14 }
 0x2d5   : > { %1957 = vpush %v1279_v16 }
 0x2d6   : > { %s1954_s27 = spop %1953 }
 0x2d7   : > { %v794_v19 = vstv %s1954_s27 }
 0x2d8   : > { %v795_v22 = vsel %vm793_vm4, %v794_v19, 0.0 }
 0x2d9   : > { %v796_v25 = vadd.f32 %v795_v22, %v551_v23 }
 0x2ee   : > { %s1956_s28 = spop %1955 }
 0x2ef   : > { %v1038_v21 = vstv %s1956_s28 }
 0x2f0   : > { %v1039_v24 = vsel %vm1037_vm6, %v1038_v21, 0.0 }
 0x2f1   : > { %v1040_v26 = vadd.f32 %v1039_v24, %v796_v25 }
 0x306   : > { %s1958_s5 = spop %1957 }
 0x307   : > { %v1282_v27 = vstv %s1958_s5 }
 0x308   : > { %v1283_v28 = vsel %vm1281_vm7, %v1282_v27, 0.0 }
 0x309   : > { %v1284_v29 = vadd.f32 %v1283_v28, %v1040_v26 }
 0x30b   : > { %1286 = vst.msk [vmem:[%s234_s6] sm:$0x1] %vm1285_vm8, %v1284_v29 }
 0x30c   : > { %2014 = shalt.err (!%p2011_p3)
}
 0x30d   : > { %s2015_s20 = scalar_lea.hbm %s2366_s10, 16  ;;  %s2019_s27 = scalar_lea.hbm %s2412_s4, 32 }
 0x30e   : > { %p2016_p4 = scmp.ne.s32.totalorder %s2366_s10, %s2015_s20  ;;  %p2020_p9 = scmp.lt.u32.totalorder %s2366_s10, %s2412_s4 }
 0x30f   : > { %p2021_p10 = scmp.lt.u32.totalorder %s2019_s27, %s2015_s20  ;;  %p2023_p12 = scmp.lt.u32.totalorder %s2015_s20, %s2366_s10 }
 0x310   : > { %p2017_p7 = pnand %p2016_p4, %p2132_p5 }
 0x311   : > { %p2022_p11 = por %p2021_p10, %p2020_p9 }
 0x312   : > { %p2018_p8 = pneg %p2017_p7 }
 0x313   : > { %p2024_p13 = por %p2023_p12, %p2022_p11 }
 0x315   : > { %p2025_p0 = pnand %p2024_p13, %p2018_p8 }
 0x317   : > { %2028 = shalt.err (!%p2025_p0)
}
 0x318   : > { %1959 = dma.vmem_to_hbm [thread:$0]  (%p2132_p5), %s2368_s7, 16, %s2366_s10, %s1288_s19  }
 0x319 PF: > { %p1965_p1 = scmp.ge.s32.totalorder %s2063_s18, 2  ;;  %s1312_s30 = sand.u32 1, %s2051_s15  }
 0x31a   : > { %s1313_s5 = scalar_lea.sflag [#allocation3], %s1312_s30 }
 0x31b   : > { %p1962_p2 = pnand %p1965_p1, %p2136_p6 }
 0x31d   : > { %2046 = dma.done.wait (!%p1962_p2), %s1313_s5, 16  }
 0x31e   : > { %2048 = vsyncadd (!%p1962_p2), %s1313_s5, 4294967280  ;;  %p14_p3 = scmp.ge.s32.totalorder %s2119_s21, 4   ;;  %s2415_s15 = smov %s2055_s16 }
 0x31f   : > { %s2416_s16 = smov %s2059_s17  ;;  %s2417_s17 = smov %s2130_s24 }
 0x320   : > { %s2418_s18 = smov %s2119_s21  ;;  %16 = sbr.rel (!%p14_p3) target bundleno = 3 (0x3), region = 86 }
 0x327   :  { %1317 = vsyncpa [#allocation3], 1 }
 0x328   :  { %1319 = vsyncpa [#allocation3 + $0x1], 1 }

</bundles_post_ra>
